<compile_context>
chip_gen: v7x
topology: tpu7x:2x2x1
jax: 0.10.0
libtpu: 0.0.40
codegen_flags: <defaults>
</compile_context>

<pallas_src>
import functools

import jax
import jax.numpy as jnp
from jax import lax
from jax.experimental import pallas as pl
from jax.experimental.pallas import tpu as pltpu

_LANE = 128


def _round_up(n, m):
    return ((n + m - 1) // m) * m


def _attn_head_kernel(x_ref, wq_ref, wk_ref, wv_ref, o_ref, *, dk_true):
    # x_ref : (bb, T, Cp)   wq/wk : (Cp, DKp)   wv : (Cp, DVp)   o_ref : (bb, T, DVp)
    bb, T, Cp = x_ref.shape
    x2 = x_ref[...].reshape(bb * T, Cp).astype(jnp.bfloat16)   # (bb*T, Cp)
    wq = wq_ref[...].astype(jnp.bfloat16)
    wk = wk_ref[...].astype(jnp.bfloat16)
    wv = wv_ref[...].astype(jnp.bfloat16)

    # Projections: one big MXU matmul each over all bb*T rows (f32 accumulation).
    q = jnp.dot(x2, wq, preferred_element_type=jnp.float32)    # (bb*T, DKp)
    k = jnp.dot(x2, wk, preferred_element_type=jnp.float32)    # (bb*T, DKp)
    v = jnp.dot(x2, wv, preferred_element_type=jnp.float32)    # (bb*T, DVp)

    # Fold 1/sqrt(dk) into q (dk_true is the *unpadded* head dim, as in PyTorch).
    scale = jnp.float32(dk_true) ** jnp.float32(-0.5)
    q3 = (q * scale).astype(jnp.bfloat16).reshape(bb, T, -1)
    k3 = k.astype(jnp.bfloat16).reshape(bb, T, -1)
    v3 = v.astype(jnp.bfloat16).reshape(bb, T, -1)

    # Scores: contraction over the head dim of both operands (no explicit k.T).
    s = jnp.einsum('bqd,bkd->bqk', q3, k3,
                   preferred_element_type=jnp.float32)          # (bb, T, T) f32

    # Causal mask (tril): col > row gets a large negative (not -inf).
    row = lax.broadcasted_iota(jnp.int32, s.shape, 1)
    col = lax.broadcasted_iota(jnp.int32, s.shape, 2)
    s = jnp.where(col <= row, s, jnp.float32(-1e30))

    # Numerically-stable softmax in f32, normalization deferred to the output.
    m = jnp.max(s, axis=-1, keepdims=True)
    e = jnp.exp(s - m)
    denom = jnp.sum(e, axis=-1, keepdims=True)                  # (bb, T, 1)

    # TODO(synk): nn.Dropout(p=0.2) is identity in eval mode; training-mode
    # stochastic dropout on the attention probabilities is omitted here.

    out = jnp.einsum('bqk,bkd->bqd', e.astype(jnp.bfloat16), v3,
                     preferred_element_type=jnp.float32)        # (bb, T, DVp)
    out = out * pl.reciprocal(denom, approx=True)               # normalize (T, dv) only
    o_ref[...] = out.astype(o_ref.dtype)


def self_attention_head(x, w_q, w_k, w_v, *, batch_block=None):
    """x: (B, T, C); w_q/w_k: (C, dk); w_v: (C, dv). Returns (B, T, dv)."""
    B, T, C = x.shape
    dk = w_q.shape[1]
    dv = w_v.shape[1]

    # Lane-dense padding of every last dim to a multiple of 128 (zeros -> exact).
    Cp = _round_up(C, _LANE)
    DKp = _round_up(dk, _LANE)
    DVp = _round_up(dv, _LANE)

    xp = jnp.pad(x, ((0, 0), (0, 0), (0, Cp - C)))
    wqp = jnp.pad(w_q, ((0, Cp - C), (0, DKp - dk)))
    wkp = jnp.pad(w_k, ((0, Cp - C), (0, DKp - dk)))
    wvp = jnp.pad(w_v, ((0, Cp - C), (0, DVp - dv)))

    if batch_block is None:
        batch_block = B          # tiny shapes: whole batch in one grid step
    nb = pl.cdiv(B, batch_block)

    kernel = functools.partial(_attn_head_kernel, dk_true=dk)

    out_p = pl.pallas_call(
        kernel,
        out_shape=jax.ShapeDtypeStruct((B, T, DVp), x.dtype),
        grid_spec=pltpu.PrefetchScalarGridSpec(
            num_scalar_prefetch=0,
            grid=(nb,),
            in_specs=[
                pl.BlockSpec((batch_block, T, Cp), lambda b: (b, 0, 0)),  # x slab
                pl.BlockSpec((Cp, DKp), lambda b: (0, 0)),                # W_q
                pl.BlockSpec((Cp, DKp), lambda b: (0, 0)),                # W_k
                pl.BlockSpec((Cp, DVp), lambda b: (0, 0)),                # W_v
            ],
            out_specs=pl.BlockSpec((batch_block, T, DVp), lambda b: (b, 0, 0)),
        ),
        compiler_params=pltpu.CompilerParams(
            dimension_semantics=("parallel",)),
    )(xp, wqp, wkp, wvp)

    return out_p[..., :dv]


def _reference(x, w_q, w_k, w_v):
    """Pure-JAX f32 reference mirroring the PyTorch forward (eval mode)."""
    q = x @ w_q
    k = x @ w_k
    v = x @ w_v
    wei = (q @ jnp.swapaxes(k, -2, -1)) * (k.shape[-1] ** -0.5)
    T = x.shape[1]
    tril = jnp.tril(jnp.ones((T, T), dtype=bool))
    wei = jnp.where(tril, wei, -jnp.inf)
    wei = jax.nn.softmax(wei, axis=-1)
    return wei @ v


if __name__ == "__main__":
    # Small shapes implied by the module: (B, T, dm) input, dk/dv head dims.
    B, T = 2, 16
    dm, dk, dv = 32, 16, 16

    key = jax.random.PRNGKey(0)
    kx, kq, kk, kv = jax.random.split(key, 4)

    x = jax.random.normal(kx, (B, T, dm), dtype=jnp.float32)
    # Deterministic "nn.Linear(dm, d, bias=False)" weights stored as (dm, d).
    w_q = jax.random.normal(kq, (dm, dk), dtype=jnp.float32) * (dm ** -0.5)
    w_k = jax.random.normal(kk, (dm, dk), dtype=jnp.float32) * (dm ** -0.5)
    w_v = jax.random.normal(kv, (dm, dv), dtype=jnp.float32) * (dm ** -0.5)

    out = self_attention_head(x, w_q, w_k, w_v)
    out = jax.block_until_ready(out)

    ref = _reference(x, w_q, w_k, w_v)
    assert out.shape == (B, T, dv)
    # bf16 MXU inputs + approx reciprocal -> compare at bf16-level tolerance.
    assert jnp.allclose(out, ref, atol=5e-2, rtol=5e-2), "mismatch vs reference"

    print("KERNEL_OK")
</pallas_src>

<mosaic_0001>
module attributes {stable_mosaic.version = 11 : i64} {
  func.func @_attn_head_kernel(%arg0: i32, %arg1: memref<2x16x128xf32, #tpu.memory_space<vmem>>, %arg2: memref<128x128xf32, #tpu.memory_space<vmem>>, %arg3: memref<128x128xf32, #tpu.memory_space<vmem>>, %arg4: memref<128x128xf32, #tpu.memory_space<vmem>>, %arg5: memref<2x16x128xf32, #tpu.memory_space<vmem>>) attributes {dimension_semantics = [#tpu.dimension_semantics<parallel>], iteration_bounds = array<i64: 1>, scalar_prefetch = 0 : i64, scratch_operands = 0 : i64, tpu.core_type = #tpu.core_type<tc>, window_params = [{transform_indices = @transform_0, window_bounds = array<i64: 2, 16, 128>}, {pipeline_mode = #tpu.pipeline_mode<synchronous>, transform_indices = @transform_1, window_bounds = array<i64: 128, 128>}, {pipeline_mode = #tpu.pipeline_mode<synchronous>, transform_indices = @transform_2, window_bounds = array<i64: 128, 128>}, {pipeline_mode = #tpu.pipeline_mode<synchronous>, transform_indices = @transform_3, window_bounds = array<i64: 128, 128>}, {transform_indices = @transform_4, window_bounds = array<i64: 2, 16, 128>}]} {
    %c0 = arith.constant 0 : index
    %c0_0 = arith.constant 0 : index
    %c0_1 = arith.constant 0 : index
    %0 = vector.load %arg1[%c0, %c0_0, %c0_1] : memref<2x16x128xf32, #tpu.memory_space<vmem>>, vector<2x16x128xf32>
    %1 = vector.shape_cast %0 : vector<2x16x128xf32> to vector<32x128xf32>
    %2 = arith.truncf %1 : vector<32x128xf32> to vector<32x128xbf16>
    %c0_2 = arith.constant 0 : index
    %c0_3 = arith.constant 0 : index
    %3 = vector.load %arg2[%c0_2, %c0_3] : memref<128x128xf32, #tpu.memory_space<vmem>>, vector<128x128xf32>
    %4 = arith.truncf %3 : vector<128x128xf32> to vector<128x128xbf16>
    %c0_4 = arith.constant 0 : index
    %c0_5 = arith.constant 0 : index
    %5 = vector.load %arg3[%c0_4, %c0_5] : memref<128x128xf32, #tpu.memory_space<vmem>>, vector<128x128xf32>
    %6 = arith.truncf %5 : vector<128x128xf32> to vector<128x128xbf16>
    %c0_6 = arith.constant 0 : index
    %c0_7 = arith.constant 0 : index
    %7 = vector.load %arg4[%c0_6, %c0_7] : memref<128x128xf32, #tpu.memory_space<vmem>>, vector<128x128xf32>
    %8 = arith.truncf %7 : vector<128x128xf32> to vector<128x128xbf16>
    %cst = arith.constant dense<0.000000e+00> : vector<32x128xf32>
    %9 = tpu.matmul %2, %4, %cst {dimension_numbers = #tpu.dot_dimension_numbers<[1], [0], [0], [1], [0, 0, 1, 1], [], []>} : vector<32x128xbf16>, vector<128x128xbf16>, vector<32x128xf32> -> vector<32x128xf32>
    %cst_8 = arith.constant dense<0.000000e+00> : vector<32x128xf32>
    %10 = tpu.matmul %2, %6, %cst_8 {dimension_numbers = #tpu.dot_dimension_numbers<[1], [0], [0], [1], [0, 0, 1, 1], [], []>} : vector<32x128xbf16>, vector<128x128xbf16>, vector<32x128xf32> -> vector<32x128xf32>
    %cst_9 = arith.constant dense<0.000000e+00> : vector<32x128xf32>
    %11 = tpu.matmul %2, %8, %cst_9 {dimension_numbers = #tpu.dot_dimension_numbers<[1], [0], [0], [1], [0, 0, 1, 1], [], []>} : vector<32x128xbf16>, vector<128x128xbf16>, vector<32x128xf32> -> vector<32x128xf32>
    %cst_10 = arith.constant 1.600000e+01 : f32
    %cst_11 = arith.constant -5.000000e-01 : f32
    %12 = math.powf %cst_10, %cst_11 : f32
    %13 = vector.broadcast %12 : f32 to vector<32x128xf32>
    %14 = arith.mulf %9, %13 : vector<32x128xf32>
    %15 = arith.truncf %14 : vector<32x128xf32> to vector<32x128xbf16>
    %16 = vector.shape_cast %15 : vector<32x128xbf16> to vector<2x16x128xbf16>
    %17 = arith.truncf %10 : vector<32x128xf32> to vector<32x128xbf16>
    %18 = vector.shape_cast %17 : vector<32x128xbf16> to vector<2x16x128xbf16>
    %19 = arith.truncf %11 : vector<32x128xf32> to vector<32x128xbf16>
    %20 = vector.shape_cast %19 : vector<32x128xbf16> to vector<2x16x128xbf16>
    "tpu.trace_start"() <{level = 10 : i32, message = "bqd,bkd->bqk"}> : () -> ()
    %cst_12 = arith.constant dense<0.000000e+00> : vector<2x16x16xf32>
    %21 = tpu.matmul %16, %18, %cst_12 {dimension_numbers = #tpu.dot_dimension_numbers<[2], [2], [1], [1], [0, 0, 0, 1, 1, 1], [0], [0]>} : vector<2x16x128xbf16>, vector<2x16x128xbf16>, vector<2x16x16xf32> -> vector<2x16x16xf32>
    "tpu.trace_stop"() : () -> ()
    %22 = tpu.iota {dimensions = array<i32: 1>} : vector<2x16x16xi32>
    %23 = tpu.iota {dimensions = array<i32: 2>} : vector<2x16x16xi32>
    %24 = arith.cmpi sle, %23, %22 : vector<2x16x16xi32>
    %cst_13 = arith.constant -1.000000e+30 : f32
    %25 = vector.broadcast %cst_13 : f32 to vector<2x16x16xf32>
    %26 = arith.select %24, %21, %25 : vector<2x16x16xi1>, vector<2x16x16xf32>
    %cst_14 = arith.constant dense<0xFF800000> : vector<2x16xf32>
    %27 = vector.multi_reduction <maximumf>, %26, %cst_14 [2] : vector<2x16x16xf32> to vector<2x16xf32>
    %28 = vector.shape_cast %27 : vector<2x16xf32> to vector<2x16x1xf32>
    %29 = vector.broadcast %28 : vector<2x16x1xf32> to vector<2x16x16xf32>
    %30 = arith.subf %26, %29 : vector<2x16x16xf32>
    %31 = math.exp %30 : vector<2x16x16xf32>
    %cst_15 = arith.constant dense<0.000000e+00> : vector<2x16xf32>
    %32 = vector.multi_reduction <add>, %31, %cst_15 [2] : vector<2x16x16xf32> to vector<2x16xf32>
    %33 = vector.shape_cast %32 : vector<2x16xf32> to vector<2x16x1xf32>
    %34 = arith.truncf %31 : vector<2x16x16xf32> to vector<2x16x16xbf16>
    "tpu.trace_start"() <{level = 10 : i32, message = "bqk,bkd->bqd"}> : () -> ()
    %cst_16 = arith.constant dense<0.000000e+00> : vector<2x16x128xf32>
    %35 = tpu.matmul %34, %20, %cst_16 {dimension_numbers = #tpu.dot_dimension_numbers<[2], [1], [1], [2], [0, 0, 0, 1, 1, 2], [0], [0]>} : vector<2x16x16xbf16>, vector<2x16x128xbf16>, vector<2x16x128xf32> -> vector<2x16x128xf32>
    "tpu.trace_stop"() : () -> ()
    %36 = tpu.reciprocal %33 {approx = true} : vector<2x16x1xf32> -> vector<2x16x1xf32>
    %37 = vector.broadcast %36 : vector<2x16x1xf32> to vector<2x16x128xf32>
    %38 = arith.mulf %35, %37 : vector<2x16x128xf32>
    %c0_17 = arith.constant 0 : index
    %c0_18 = arith.constant 0 : index
    %c0_19 = arith.constant 0 : index
    %39 = vector.load %arg5[%c0_17, %c0_18, %c0_19] : memref<2x16x128xf32, #tpu.memory_space<vmem>>, vector<2x16x128xf32>
    tpu.vector_store %arg5[%c0_17, %c0_18, %c0_19], %38 {strides = array<i32>} : memref<2x16x128xf32, #tpu.memory_space<vmem>>, vector<2x16x128xf32>,
    return
  }
  func.func @transform_0(%arg0: i32) -> (i32, i32, i32) {
    %c0_i32 = arith.constant 0 : i32
    %c0_i32_0 = arith.constant 0 : i32
    %c0_i32_1 = arith.constant 0 : i32
    return %arg0, %c0_i32, %c0_i32_0 : i32, i32, i32
  }
  func.func @transform_1(%arg0: i32) -> (i32, i32) {
    %c0_i32 = arith.constant 0 : i32
    %c0_i32_0 = arith.constant 0 : i32
    %c0_i32_1 = arith.constant 0 : i32
    return %c0_i32, %c0_i32_0 : i32, i32
  }
  func.func @transform_2(%arg0: i32) -> (i32, i32) {
    %c0_i32 = arith.constant 0 : i32
    %c0_i32_0 = arith.constant 0 : i32
    %c0_i32_1 = arith.constant 0 : i32
    return %c0_i32, %c0_i32_0 : i32, i32
  }
  func.func @transform_3(%arg0: i32) -> (i32, i32) {
    %c0_i32 = arith.constant 0 : i32
    %c0_i32_0 = arith.constant 0 : i32
    %c0_i32_1 = arith.constant 0 : i32
    return %c0_i32, %c0_i32_0 : i32, i32
  }
  func.func @transform_4(%arg0: i32) -> (i32, i32, i32) {
    %c0_i32 = arith.constant 0 : i32
    %c0_i32_0 = arith.constant 0 : i32
    %c0_i32_1 = arith.constant 0 : i32
    return %arg0, %c0_i32, %c0_i32_0 : i32, i32, i32
  }
}

</mosaic_0001>

<bundles_post_ra>
// kernel: tpu_custom_call.1
= control target key start
LH: loop header
LB: loop body
LE: loop exit
PB: predicated region body
PF: predicated region fallthrough
CT: control target
= control target key end

     0   :  { %9 = vsyncpa [#allocation3], 0  ;;  %s972_s0 = inlined_call_operand.hbm [shape: f32[2,16,128], index: 0, kind: input, shape index: {}]   ;;  %s973_s1 = inlined_call_operand.hbm [shape: f32[128,128], index: 1, kind: input, shape index: {}]   ;;  %s974_s2 = inlined_call_operand.hbm [shape: f32[128,128], index: 2, kind: input, shape index: {}]   ;;  %s975_s3 = inlined_call_operand.hbm [shape: f32[128,128], index: 3, kind: input, shape index: {}]   ;;  %s976_s4 = inlined_call_operand.hbm [shape: f32[2,16,128], index: 4, kind: output, shape index: {}]  }
   0x1   :  { %10 = vsyncpa [#allocation6], 0 }
   0x2   :  { %11 = vsyncpa [#allocation9], 0 }
   0x3   :  { %12 = vsyncpa [#allocation4], 0  ;;  %s827_s15 = smov [#allocation5]   ;;  %s828_s17 = smov [#allocation2]  }
   0x4   :  { %s30_s16 = sshll.u32 %s827_s15, 4  ;;  %s18_s18 = sshll.u32 %s828_s17, 4  ;;  %s31_s16 = int_to_ptr.vmem [resolvable:$true] %s30_s16  ;;  %s861_s18 = int_to_ptr.vmem [resolvable:$true] %s18_s18 }
   0x5   :  { %s709_s21 = scalar_lea.hbm %s973_s1, 2048 }
   0x6   :  { %p710_p0 = scmp.ne.s32.totalorder %s973_s1, %s709_s21  ;;  %p713_p1 = scmp.lt.u32.totalorder %s709_s21, %s973_s1 }
   0x8   :  { %p715_p2 = pnand %p713_p1, %p710_p0 }
   0xa   :  { %718 = shalt.err (!%p715_p2)
}
   0xb   :  { %s719_s26 = scalar_lea.vmem %s31_s16, 2048  ;;  %p724_p4 = scmp.lt.s32.totalorder %s31_s16, %s31_s16 }
   0xc   :  { %p720_p3 = scmp.ne.s32.totalorder %s31_s16, %s719_s26  ;;  %p725_p5 = scmp.lt.s32.totalorder %s719_s26, %s719_s26 }
   0xe   :  { %p726_p6 = por %p725_p5, %p724_p4 }
  0x10   :  { %p727_p7 = pnand %p726_p6, %p720_p3 }
  0x12   :  { %730 = shalt.err (!%p727_p7)
}
  0x13   :  { %s829_s27 = smov 128   ;;  %s830_s28 = smov 8  }
  0x14   :  { %36 = dma.hbm_to_vmem [thread:$0]  %s973_s1, 2048, %s31_s16, [#allocation6], %s829_s27, %s829_s27, %s830_s28  }
  0x15   :  { %s731_s7 = scalar_lea.hbm %s972_s0, 512 }
  0x16   :  { %p732_p8 = scmp.ne.s32.totalorder %s972_s0, %s731_s7  ;;  %p735_p9 = scmp.lt.u32.totalorder %s731_s7, %s972_s0 }
  0x18   :  { %p737_p10 = pnand %p735_p9, %p732_p8 }
  0x1a   :  { %740 = shalt.err (!%p737_p10)
}
  0x1b   :  { %s741_s12 = scalar_lea.vmem %s861_s18, 512  ;;  %p746_p12 = scmp.lt.s32.totalorder %s861_s18, %s861_s18 }
  0x1c   :  { %p742_p11 = scmp.ne.s32.totalorder %s861_s18, %s741_s12  ;;  %p747_p13 = scmp.lt.s32.totalorder %s741_s12, %s741_s12 }
  0x1e   :  { %p748_p0 = por %p747_p13, %p746_p12 }
  0x20   :  { %p749_p1 = pnand %p748_p0, %p742_p11 }
  0x22   :  { %752 = shalt.err (!%p749_p1)
}
  0x23   :  { %24 = dma.hbm_to_vmem [thread:$0]  %s972_s0, 512, %s861_s18, [#allocation3], %s829_s27, %s829_s27, %s830_s28  }
  0x24   :  { %s831_s14 = smov [#allocation7]   ;;  %s832_s16 = smov [#allocation8]  }
  0x25   :  { %s42_s15 = sshll.u32 %s831_s14, 4  ;;  %s54_s17 = sshll.u32 %s832_s16, 4  ;;  %s43_s15 = int_to_ptr.vmem [resolvable:$true] %s42_s15  ;;  %s898_s17 = int_to_ptr.vmem [resolvable:$true] %s54_s17 }
  0x26   :  { %s753_s21 = scalar_lea.hbm %s974_s2, 2048 }
  0x27   :  { %p754_p2 = scmp.ne.s32.totalorder %s974_s2, %s753_s21  ;;  %p757_p3 = scmp.lt.u32.totalorder %s753_s21, %s974_s2 }
  0x29   :  { %p759_p4 = pnand %p757_p3, %p754_p2 }
  0x2b   :  { %762 = shalt.err (!%p759_p4)
}
  0x2c   :  { %s763_s0 = scalar_lea.vmem %s43_s15, 2048  ;;  %p768_p6 = scmp.lt.s32.totalorder %s43_s15, %s43_s15 }
  0x2d   :  { %p764_p5 = scmp.ne.s32.totalorder %s43_s15, %s763_s0  ;;  %p769_p7 = scmp.lt.s32.totalorder %s763_s0, %s763_s0 }
  0x2f   :  { %p770_p8 = por %p769_p7, %p768_p6 }
  0x31   :  { %p771_p9 = pnand %p770_p8, %p764_p5 }
  0x33   :  { %774 = shalt.err (!%p771_p9)
}
  0x34   :  { %48 = dma.hbm_to_vmem [thread:$0]  %s974_s2, 2048, %s43_s15, [#allocation6], %s829_s27, %s829_s27, %s830_s28  }
  0x35   :  { %s775_s5 = scalar_lea.hbm %s975_s3, 2048 }
  0x36   :  { %p776_p10 = scmp.ne.s32.totalorder %s975_s3, %s775_s5  ;;  %p779_p11 = scmp.lt.u32.totalorder %s775_s5, %s975_s3 }
  0x38   :  { %p781_p12 = pnand %p779_p11, %p776_p10 }
  0x3a   :  { %784 = shalt.err (!%p781_p12)
}
  0x3b   :  { %s785_s10 = scalar_lea.vmem %s898_s17, 2048  ;;  %p790_p0 = scmp.lt.s32.totalorder %s898_s17, %s898_s17 }
  0x3c   :  { %p786_p13 = scmp.ne.s32.totalorder %s898_s17, %s785_s10  ;;  %p791_p1 = scmp.lt.s32.totalorder %s785_s10, %s785_s10 }
  0x3e   :  { %p792_p2 = por %p791_p1, %p790_p0 }
  0x40   :  { %p793_p3 = pnand %p792_p2, %p786_p13 }
  0x42   :  { %796 = shalt.err (!%p793_p3)
}
  0x43   :  { %60 = dma.hbm_to_vmem [thread:$0]  %s975_s3, 2048, %s898_s17, [#allocation9], %s829_s27, %s829_s27, %s830_s28  }
  0x44   :  { %819 = dma.done.wait [#allocation3], 512  }
  0x45   :  { %820 = vsyncadd [#allocation3], 4294966784 }
  0x46   :  { %821 = dma.done.wait [#allocation6], 4096  }
  0x47   :  { %822 = vsyncadd [#allocation6], 4294963200 }
  0x48   :  { %823 = dma.done.wait [#allocation9], 2048  }
  0x49   :  { %824 = vsyncadd [#allocation9], 4294965248  ;;  %v104_v0 = vld [vmem:[#allocation7] sm:$0xff]  ;;  %v105_v1 = vld [vmem:[#allocation7 + $0x8] sm:$0xff]  ;;  %v833_v54 = vmov 0.0   ;;  %vm834_vm0 = vmmov 0  }
  0x4a   :  { %v80_v2 = vld [vmem:[#allocation5] sm:$0xff]  ;;  %v120_v3 = vpack.c.bf16 %v105_v1, %v104_v0  ;;  %v81_v4 = vld [vmem:[#allocation5 + $0x8] sm:$0xff]  ;;  %v106_v5 = vld [vmem:[#allocation7 + $0x10] sm:$0xff]  ;;  %vm402_vm2 = vcmask 130048   ;;  %s835_s3 = smov [#allocation10]  }
  0x4b   :  { %v107_v6 = vld [vmem:[#allocation7 + $0x18] sm:$0xff]  ;;  %v96_v7 = vpack.c.bf16 %v81_v4, %v80_v2  ;;  %v82_v9 = vld [vmem:[#allocation5 + $0x10] sm:$0xff]  ;;  %v108_v11 = vld [vmem:[#allocation7 + $0x20] sm:$0xff]  ;;  %s546_s12 = sshll.u32 %s835_s3, 4  ;;  %s547_s12 = int_to_ptr.vmem [resolvable:$true] %s546_s12 }
  0x4c   :  { %v121_v8 = vpack.c.bf16 %v107_v6, %v106_v5  ;;  %v83_v10 = vld [vmem:[#allocation5 + $0x18] sm:$0xff]  ;;  %620 = vmatprep.subr.bf16.mxu1 %v120_v3  ;;  %v109_v13 = vld [vmem:[#allocation7 + $0x28] sm:$0xff]  ;;  %v84_v14 = vld [vmem:[#allocation5 + $0x20] sm:$0xff]  ;;  %s797_s1 = scalar_lea.vmem %s547_s12, 512  ;;  %p802_p5 = scmp.lt.s32.totalorder %s547_s12, %s547_s12 }
  0x4d   :  { %v97_v12 = vpack.c.bf16 %v83_v10, %v82_v9  ;;  %v85_v15 = vld [vmem:[#allocation5 + $0x28] sm:$0xff]  ;;  %621 = vmatpush3.bf16.msra.mxu1 %v120_v3  ;;  %600 = vmatprep.subr.bf16.mxu0 %v96_v7  ;;  %v122_v16 = vpack.c.bf16 %v109_v13, %v108_v11  ;;  %v110_v18 = vld [vmem:[#allocation7 + $0x30] sm:$0xff]  ;;  %v111_v19 = vld [vmem:[#allocation7 + $0x38] sm:$0xff]  ;;  %p798_p4 = scmp.ne.s32.totalorder %s547_s12, %s797_s1  ;;  %p803_p6 = scmp.lt.s32.totalorder %s797_s1, %s797_s1 }
  0x4e   :  { %601 = vmatpush3.bf16.msra.mxu0 %v96_v7  ;;  %622 = vmatprep.subr.bf16.mxu1 %v121_v8  ;;  %v98_v17 = vpack.c.bf16 %v85_v15, %v84_v14  ;;  %v86_v20 = vld [vmem:[#allocation5 + $0x30] sm:$0xff]  ;;  %v87_v21 = vld [vmem:[#allocation5 + $0x38] sm:$0xff]  ;;  %v123_v22 = vpack.c.bf16 %v111_v19, %v110_v18  ;;  %v112_v24 = vld [vmem:[#allocation7 + $0x40] sm:$0xff] }
  0x4f   :  { %602 = vmatprep.subr.bf16.mxu0 %v97_v12  ;;  %v99_v23 = vpack.c.bf16 %v87_v21, %v86_v20  ;;  %v113_v25 = vld [vmem:[#allocation7 + $0x48] sm:$0xff]  ;;  %v74_v26 = vld [vmem:[#allocation2] sm:$0xff]  ;;  %v114_v33 = vld [vmem:[#allocation7 + $0x50] sm:$0xff]  ;;  %p804_p7 = por %p803_p6, %p802_p5 }
  0x50   :  { %v88_v27 = vld [vmem:[#allocation5 + $0x40] sm:$0xff]  ;;  %v89_v28 = vld [vmem:[#allocation5 + $0x48] sm:$0xff]  ;;  %v124_v31 = vpack.c.bf16 %v113_v25, %v112_v24  ;;  %v115_v34 = vld [vmem:[#allocation7 + $0x58] sm:$0xff] }
  0x51   :  { %623 = vmatpush3.bf16.msra.mxu1 %v121_v8  ;;  %v75_v29 = vld [vmem:[#allocation2 + $0x8] sm:$0xff]  ;;  %v100_v32 = vpack.c.bf16 %v89_v28, %v88_v27  ;;  %v90_v35 = vld [vmem:[#allocation5 + $0x50] sm:$0xff]  ;;  %v91_v36 = vld [vmem:[#allocation5 + $0x58] sm:$0xff]  ;;  %v125_v37 = vpack.c.bf16 %v115_v34, %v114_v33  ;;  %p805_p8 = pnand %p804_p7, %p798_p4 }
  0x52   :  { %603 = vmatpush3.bf16.msra.mxu0 %v97_v12  ;;  %624 = vmatprep.subr.bf16.mxu1 %v122_v16  ;;  %v78_v30 = vpack.c.bf16 %v75_v29, %v74_v26  ;;  %v101_v38 = vpack.c.bf16 %v91_v36, %v90_v35  ;;  %v116_v39 = vld [vmem:[#allocation7 + $0x60] sm:$0xff]  ;;  %v117_v40 = vld [vmem:[#allocation7 + $0x68] sm:$0xff]  ;;  %v118_v45 = vld [vmem:[#allocation7 + $0x70] sm:$0xff] }
  0x53   :  { %604 = vmatprep.subr.bf16.mxu0 %v98_v17  ;;  %v92_v41 = vld [vmem:[#allocation5 + $0x60] sm:$0xff]  ;;  %v93_v42 = vld [vmem:[#allocation5 + $0x68] sm:$0xff]  ;;  %v126_v43 = vpack.c.bf16 %v117_v40, %v116_v39  ;;  %v119_v46 = vld [vmem:[#allocation7 + $0x78] sm:$0xff] }
  0x54   :  { %636 = vmatprep.mubr.bf16.mxu1 %v78_v30  ;;  %616 = vmatprep.mubr.bf16.mxu0 %v78_v30  ;;  %v102_v44 = vpack.c.bf16 %v93_v42, %v92_v41  ;;  %v94_v47 = vld [vmem:[#allocation5 + $0x70] sm:$0xff]  ;;  %v95_v48 = vld [vmem:[#allocation5 + $0x78] sm:$0xff]  ;;  %v127_v49 = vpack.c.bf16 %v119_v46, %v118_v45  ;;  %v128_v55 = vld [vmem:[#allocation8] sm:$0xff] }
  0x55   :  { %625 = vmatpush3.bf16.msra.mxu1 %v122_v16  ;;  %v103_v50 = vpack.c.bf16 %v95_v48, %v94_v47  ;;  %v76_v51 = vld [vmem:[#allocation2 + $0x10] sm:$0xff]  ;;  %v77_v52 = vld [vmem:[#allocation2 + $0x18] sm:$0xff]  ;;  %v129_v56 = vld [vmem:[#allocation8 + $0x8] sm:$0xff] }
  0x56   :  { %605 = vmatpush3.bf16.msra.mxu0 %v98_v17  ;;  %626 = vmatprep.subr.bf16.mxu1 %v123_v22  ;;  %v79_v53 = vpack.c.bf16 %v77_v52, %v76_v51  ;;  %v130_v57 = vld [vmem:[#allocation8 + $0x10] sm:$0xff]  ;;  %v144_v58 = vpack.c.bf16 %v129_v56, %v128_v55  ;;  %v131_v59 = vld [vmem:[#allocation8 + $0x18] sm:$0xff]  ;;  %v132_v61 = vld [vmem:[#allocation8 + $0x20] sm:$0xff] }
  0x57   :  { %606 = vmatprep.subr.bf16.mxu0 %v99_v23  ;;  %v145_v60 = vpack.c.bf16 %v131_v59, %v130_v57  ;;  %v133_v62 = vld [vmem:[#allocation8 + $0x28] sm:$0xff]  ;;  %v134_v0 = vld [vmem:[#allocation8 + $0x30] sm:$0xff]  ;;  %v135_v1 = vld [vmem:[#allocation8 + $0x38] sm:$0xff] }
  0x58   :  { %v146_v63 = vpack.c.bf16 %v133_v62, %v132_v61  ;;  %v147_v2 = vpack.c.bf16 %v135_v1, %v134_v0  ;;  %v136_v3 = vld [vmem:[#allocation8 + $0x40] sm:$0xff]  ;;  %v137_v4 = vld [vmem:[#allocation8 + $0x48] sm:$0xff]  ;;  %v138_v6 = vld [vmem:[#allocation8 + $0x50] sm:$0xff] }
  0x59   :  { %627 = vmatpush3.bf16.msra.mxu1 %v123_v22  ;;  %v148_v5 = vpack.c.bf16 %v137_v4, %v136_v3  ;;  %v139_v7 = vld [vmem:[#allocation8 + $0x58] sm:$0xff]  ;;  %v140_v9 = vld [vmem:[#allocation8 + $0x60] sm:$0xff]  ;;  %v141_v10 = vld [vmem:[#allocation8 + $0x68] sm:$0xff] }
  0x5a   :  { %607 = vmatpush3.bf16.msra.mxu0 %v99_v23  ;;  %628 = vmatprep.subr.bf16.mxu1 %v124_v31  ;;  %v149_v8 = vpack.c.bf16 %v139_v7, %v138_v6  ;;  %v150_v11 = vpack.c.bf16 %v141_v10, %v140_v9  ;;  %v142_v12 = vld [vmem:[#allocation8 + $0x70] sm:$0xff]  ;;  %v143_v13 = vld [vmem:[#allocation8 + $0x78] sm:$0xff] }
  0x5b   :  { %608 = vmatprep.subr.bf16.mxu0 %v100_v32  ;;  %v151_v14 = vpack.c.bf16 %v143_v13, %v142_v12 }
  0x5d   :  { %629 = vmatpush3.bf16.msra.mxu1 %v124_v31  ;;  %v391_v31 = vlaneseq }
  0x5e   :  { %609 = vmatpush3.bf16.msra.mxu0 %v100_v32  ;;  %630 = vmatprep.subr.bf16.mxu1 %v125_v37 }
  0x5f   :  { %610 = vmatprep.subr.bf16.mxu0 %v101_v38  ;;  %v392_v32 = vshrl.u32 %v391_v31, 7  ;;  %v395_v33 = vand.u32 127, %v391_v31 }
  0x61   :  { %631 = vmatpush3.bf16.msra.mxu1 %v125_v37  ;;  %v393_v34 = vadd.s32 8, %v392_v32  ;;  %vm396_vm1 = vcmp.le.s32.totalorder %v395_v33, %v392_v32 }
  0x62   :  { %611 = vmatpush3.bf16.msra.mxu0 %v101_v38  ;;  %632 = vmatprep.subr.bf16.mxu1 %v126_v43 }
  0x63   :  { %612 = vmatprep.subr.bf16.mxu0 %v102_v44  ;;  %vm397_vm3 = vcmp.le.s32.totalorder %v395_v33, %v393_v34 }
  0x65   :  { %633 = vmatpush3.bf16.msra.mxu1 %v126_v43 }
  0x66   :  { %613 = vmatpush3.bf16.msra.mxu0 %v102_v44  ;;  %634 = vmatprep.subr.bf16.mxu1 %v127_v49 }
  0x67   :  { %614 = vmatprep.subr.bf16.mxu0 %v103_v50 }
  0x69   :  { %635 = vmatpush3.bf16.msra.mxu1 %v127_v49 }
  0x6a   :  { %615 = vmatpush3.bf16.msra.mxu0 %v103_v50  ;;  %660 = vmatprep.subr.bf16.mxu1 %v833_v54 }
  0x6b   :  { %640 = vmatprep.subr.bf16.mxu0 %v144_v58 }
  0x6c   :  { %637 = vmatmul.mubr.bf16.vlgmr.msra.gmra.mrb[0].mxu1 %v79_v53 }
  0x6d   :  { %617 = vmatmul.mubr.bf16.vlgmr.msra.gmra.mrb[0].mxu0 %v79_v53  ;;  %662 = vmatprep.mubr.msk.bf16.mxu1 %vm834_vm0, %v833_v54 }
  0x6e   :  { %656 = vmatprep.mubr.bf16.mxu0 %v78_v30  ;;  %641 = vmatpush3.bf16.msra.mxu0 %v144_v58 }
  0x6f   :  { %642 = vmatprep.subr.bf16.mxu0 %v145_v60 }
  0x72   :  { %643 = vmatpush3.bf16.msra.mxu0 %v145_v60 }
  0x73   :  { %644 = vmatprep.subr.bf16.mxu0 %v146_v63 }
  0x76   :  { %645 = vmatpush3.bf16.msra.mxu0 %v146_v63 }
  0x77   :  { %646 = vmatprep.subr.bf16.mxu0 %v147_v2 }
  0x7a   :  { %647 = vmatpush3.bf16.msra.mxu0 %v147_v2 }
  0x7b   :  { %648 = vmatprep.subr.bf16.mxu0 %v148_v5 }
  0x7e   :  { %649 = vmatpush3.bf16.msra.mxu0 %v148_v5 }
  0x7f   :  { %650 = vmatprep.subr.bf16.mxu0 %v149_v8 }
  0x82   :  { %651 = vmatpush3.bf16.msra.mxu0 %v149_v8 }
  0x83   :  { %652 = vmatprep.subr.bf16.mxu0 %v150_v11 }
  0x86   :  { %653 = vmatpush3.bf16.msra.mxu0 %v150_v11 }
  0x87   :  { %654 = vmatprep.subr.bf16.mxu0 %v151_v14 }
  0x8a   :  { %655 = vmatpush3.bf16.msra.mxu0 %v151_v14 }
  0x8d   :  { %657 = vmatmul.mubr.bf16.vlgmr.msra.gmra.mrb[4].mxu0 %v79_v53 }
 0x13f   :  { %v638_v15 = vpop.f32.mrb[0].mxu1 }
 0x140   :  { %v235_v16 = vpop.f32.mrb[1].mxu1  ;;  %v618_v17 = vpop.f32.mrb[0].mxu0 }
 0x141   :  { %v639_v18 = vpop.f32.mrb[2].mxu1  ;;  %v301_v19 = vmul.f32 0.25, %v618_v17  ;;  %v186_v20 = vpop.f32.mrb[1].mxu0 }
 0x142   :  { %v306_v21 = vpack.c.bf16 %v639_v18, %v638_v15  ;;  %v238_v22 = vpop.f32.mrb[3].mxu1  ;;  %v299_v23 = vmul.f32 0.25, %v186_v20  ;;  %v619_v24 = vpop.f32.mrb[2].mxu0 }
 0x143   :  { %v305_v25 = vpack.c.bf16 %v238_v22, %v235_v16  ;;  %v302_v26 = vmul.f32 0.25, %v619_v24  ;;  %v189_v27 = vpop.f32.mrb[3].mxu0 }
 0x144   :  { %v300_v28 = vmul.f32 0.25, %v189_v27 }
 0x145   :  { %v304_v29 = vpack.c.bf16 %v302_v26, %v301_v19  ;;  %661 = vmatpush3.bf16.xpose.msra.mxu1 %v305_v25 }
 0x146   :  { %v303_v30 = vpack.c.bf16 %v300_v28, %v299_v23  ;;  %666 = vmatprep.subr.bf16.mxu1 %v833_v54 }
 0x14c   :  { %663 = vmatmul.mubr.bf16.vlgmr.msra.gmra.mrb[4].mxu1 %v303_v30 }
 0x14d   :  { %667 = vmatpush3.bf16.xpose.msra.mxu1 %v306_v21  ;;  %668 = vmatprep.mubr.msk.bf16.mxu1 %vm834_vm0, %v833_v54 }
 0x14e   :  { %672 = vmatprep.subr.bf16.mxu1 %v833_v54 }
 0x154   :  { %669 = vmatmul.mubr.bf16.vlgmr.msra.gmra.mrb[8].mxu1 %v304_v29 }
 0x155   :  { %674 = vmatprep.mubr.msk.bf16.mxu1 %vm834_vm0, %v833_v54 }
 0x160   :  { %v658_v51 = vpop.f32.mrb[4].mxu0 }
 0x161   :  { %v284_v52 = vpop.f32.mrb[5].mxu0 }
 0x162   :  { %v659_v53 = vpop.f32.mrb[6].mxu0 }
 0x163   :  { %v308_v55 = vpack.c.bf16 %v659_v53, %v658_v51  ;;  %v287_v56 = vpop.f32.mrb[7].mxu0 }
 0x164   :  { %v307_v57 = vpack.c.bf16 %v287_v56, %v284_v52 }
 0x166   :  { %673 = vmatpush3.bf16.msra.mxu1 %v307_v57 }
 0x167   :  { %678 = vmatprep.subr.bf16.mxu1 %v833_v54 }
 0x21f   :  { %v343_v35 = vpop.f32.mrb[4].mxu1 }
 0x220   :  { %v398_v36 = vsel %vm396_vm1, %v343_v35, -1e+30  ;;  %v664_v37 = vpop.f32.mrb[5].mxu1 }
 0x221   :  { %v346_v38 = vpop.f32.mrb[6].mxu1  ;;  %v403_v39 = vsel %vm402_vm2, %v398_v36, -inf }
 0x222   :  { %v399_v40 = vsel %vm397_vm3, %v346_v38, -1e+30  ;;  %404 = vmax.xlane.f32.xlu0 %v403_v39  ;;  %v665_v41 = vpop.f32.mrb[7].mxu1 }
 0x223   :  { %v406_v42 = vsel %vm402_vm2, %v399_v40, -inf }
 0x226   :  { %407 = vmax.xlane.f32.xlu0 %v406_v42 }
 0x227   :  { %v384_v43 = vpop.f32.mrb[8].mxu1 }
 0x228   :  { %v400_v44 = vsel %vm396_vm1, %v384_v43, -1e+30  ;;  %v670_v45 = vpop.f32.mrb[9].mxu1 }
 0x229   :  { %v387_v46 = vpop.f32.mrb[10].mxu1  ;;  %v409_v47 = vsel %vm402_vm2, %v400_v44, -inf }
 0x22a   :  { %v401_v48 = vsel %vm397_vm3, %v387_v46, -1e+30  ;;  %410 = vmax.xlane.f32.xlu1 %v409_v47  ;;  %v671_v49 = vpop.f32.mrb[11].mxu1 }
 0x22b   :  { %v412_v50 = vsel %vm402_vm2, %v401_v48, -inf }
 0x22e   :  { %413 = vmax.xlane.f32.xlu1 %v412_v50 }
 0x2af   :  { %v405_v58 = vpop.xlane.xlu0 %404 }
 0x2b0   :  { %v415_v59 = vsub.f32 %v398_v36, %v405_v58 }
 0x2b2   :  { %v419_v60 = vmul.f32 1.442695, %v415_v59 }
 0x2b3   :  { %v408_v61 = vpop.xlane.xlu0 %407 }
 0x2b4   :  { %693 = vpow2.f32 %v419_v60  ;;  %v416_v62 = vsub.f32 %v399_v40, %v408_v61 }
 0x2b6   :  { %v421_v63 = vmul.f32 1.442695, %v416_v62 }
 0x2b7   :  { %v411_v0 = vpop.xlane.xlu1 %410 }
 0x2b8   :  { %695 = vpow2.f32 %v421_v63  ;;  %v417_v1 = vsub.f32 %v400_v44, %v411_v0 }
 0x2ba   :  { %v423_v2 = vmul.f32 1.442695, %v417_v1 }
 0x2bb   :  { %v414_v3 = vpop.xlane.xlu1 %413 }
 0x2bc   :  { %697 = vpow2.f32 %v423_v2  ;;  %v418_v4 = vsub.f32 %v401_v48, %v414_v3 }
 0x2be   :  { %v694_v5 = vpop.eup %693  ;;  %v425_v6 = vmul.f32 1.442695, %v418_v4 }
 0x2bf   :  { %v427_v7 = vsel %vm402_vm2, %v694_v5, 0.0 }
 0x2c0   :  { %699 = vpow2.f32 %v425_v6  ;;  %428 = vadd.xlane.f32.xlu0 %v427_v7 }
 0x2c2   :  { %v696_v8 = vpop.eup %695 }
 0x2c3   :  { %v430_v9 = vsel %vm402_vm2, %v696_v8, 0.0  ;;  %v439_v10 = vpack.c.bf16 %v696_v8, %v694_v5 }
 0x2c4   :  { %431 = vadd.xlane.f32.xlu1 %v430_v9 }
 0x2c5   :  { %675 = vmatmul.mubr.msk.bf16.vlgmr.msra.gmra.mrb[12].mxu1 %vm402_vm2, %v439_v10 }
 0x2c6   :  { %v698_v11 = vpop.eup %697  ;;  %679 = vmatpush3.bf16.msra.mxu1 %v308_v55  ;;  %680 = vmatprep.mubr.msk.bf16.mxu1 %vm834_vm0, %v833_v54 }
 0x2c7   :  { %v433_v12 = vsel %vm402_vm2, %v698_v11, 0.0 }
 0x2c8   :  { %434 = vadd.xlane.f32.xlu0 %v433_v12 }
 0x2ca   :  { %v700_v13 = vpop.eup %699 }
 0x2cb   :  { %v436_v14 = vsel %vm402_vm2, %v700_v13, 0.0  ;;  %v440_v15 = vpack.c.bf16 %v700_v13, %v698_v11 }
 0x2cc   :  { %437 = vadd.xlane.f32.xlu1 %v436_v14 }
 0x2cd   :  { %681 = vmatmul.mubr.msk.bf16.vlgmr.msra.gmra.mrb[16].mxu1 %vm402_vm2, %v440_v15 }
 0x34d   :  { %v429_v16 = vpop.xlane.xlu0 %428 }
 0x34e   :  { %701 = vrcp.f32 %v429_v16 }
 0x351   :  { %v432_v17 = vpop.xlane.xlu1 %431 }
 0x352   :  { %703 = vrcp.f32 %v432_v17 }
 0x355   :  { %v435_v18 = vpop.xlane.xlu0 %434 }
 0x356   :  { %705 = vrcp.f32 %v435_v18 }
 0x358   :  { %v702_v20 = vpop.eup %701 }
 0x359   :  { %v438_v19 = vpop.xlane.xlu1 %437 }
 0x35a   :  { %707 = vrcp.f32 %v438_v19 }
 0x35c   :  { %v704_v23 = vpop.eup %703 }
 0x360   :  { %v706_v27 = vpop.eup %705 }
 0x364   :  { %v708_v31 = vpop.eup %707 }
 0x398   :  { %v478_v54 = vpop.f32.mrb[12].mxu1 }
 0x399   :  { %v533_v21 = vmul.f32 %v702_v20, %v478_v54  ;;  %v676_v22 = vpop.f32.mrb[13].mxu1 }
 0x39a   :  { %v481_v24 = vpop.f32.mrb[14].mxu1 }
 0x39b   :  { %537 = vst [vmem:[#allocation10] sm:$0xff] %v533_v21  ;;  %v534_v25 = vmul.f32 %v704_v23, %v481_v24  ;;  %v677_v26 = vpop.f32.mrb[15].mxu1 }
 0x39d   :  { %538 = vst [vmem:[#allocation10 + $0x8] sm:$0xff] %v534_v25 }
 0x3a0   :  { %v522_v28 = vpop.f32.mrb[16].mxu1 }
 0x3a1   :  { %v535_v29 = vmul.f32 %v706_v27, %v522_v28  ;;  %v682_v30 = vpop.f32.mrb[17].mxu1 }
 0x3a2   :  { %v525_v32 = vpop.f32.mrb[18].mxu1 }
 0x3a3   :  { %539 = vst [vmem:[#allocation10 + $0x10] sm:$0xff] %v535_v29  ;;  %v536_v33 = vmul.f32 %v708_v31, %v525_v32  ;;  %v683_v34 = vpop.f32.mrb[19].mxu1 }
 0x3a5   :  { %540 = vst [vmem:[#allocation10 + $0x18] sm:$0xff] %v536_v33 }
 0x3a6   :  { %808 = shalt.err (!%p805_p8)
}
 0x3a7   :  { %s809_s15 = scalar_lea.hbm %s976_s4, 512 }
 0x3a8   :  { %p810_p9 = scmp.ne.s32.totalorder %s976_s4, %s809_s15  ;;  %p813_p10 = scmp.lt.u32.totalorder %s809_s15, %s976_s4 }
 0x3aa   :  { %p815_p11 = pnand %p813_p10, %p810_p9 }
 0x3ac   :  { %818 = shalt.err (!%p815_p11)
}
 0x3ad   :  { %552 = dma.vmem_to_hbm [thread:$0]  %s547_s12, 512, %s976_s4, [#allocation4], %s829_s27, %s829_s27, %s830_s28  }
 0x3ae   :  { %825 = dma.done.wait [#allocation4], 512  }
 0x3af   :  { %826 = vsyncadd [#allocation4], 4294966784 }
 0x3b0   :  { %556 = vsyncpa [#allocation3], 1 }
 0x3b1   :  { %557 = vsyncpa [#allocation6], 1 }
 0x3b2   :  { %558 = vsyncpa [#allocation9], 1 }
 0x3b3   :  { %559 = vsyncpa [#allocation4], 1 }

</bundles_post_ra>
